<compile_context>
chip_gen: v7x
topology: tpu7x:2x2x1
jax: 0.10.0
libtpu: 0.0.40
codegen_flags: <defaults>
</compile_context>

<pallas_src>
import functools

import jax
import jax.numpy as jnp
from jax.experimental import pallas as pl
from jax.experimental.pallas import tpu as pltpu


def _round_up(x, m):
    return ((x + m - 1) // m) * m


def _cdiv(a, b):
    return -(-a // b)


def _largest_aligned_divisor(n, align, max_val):
    """Largest divisor of n that is a multiple of `align` and <= max_val."""
    best = None
    d = align
    limit = min(n, max_val)
    while d <= limit:
        if n % d == 0:
            best = d
        d += align
    return best


def _vmem_budget_bytes():
    """~80% of physical VMEM for the current generation (v5e/v6e: ~102 MiB,
    v7x: ~51 MiB); conservative fallback if the query is unavailable."""
    try:
        cap = int(pltpu.get_tpu_info().vmem_capacity_bytes)
    except Exception:
        cap = 64 * 1024 * 1024
    return max(int(cap * 0.8), 32 * 1024 * 1024)


# ----------------------------------------------------------------------------
# Kernels
# ----------------------------------------------------------------------------
def _ffn_kernel_single(x_ref, w1_ref, b1_ref, w2_ref, b2_ref, o_ref):
    # Full hidden dim resident: straight write to o_ref, no accumulator scratch.
    x = x_ref[...].astype(w1_ref.dtype)                      # in-kernel cast
    h = jnp.dot(x, w1_ref[...], preferred_element_type=jnp.float32)
    h = jnp.maximum(h + b1_ref[...], 0.0)                    # bias + ReLU in f32
    y = jnp.dot(h.astype(w2_ref.dtype), w2_ref[...],
                preferred_element_type=jnp.float32)
    o_ref[...] = (y + b2_ref[...]).astype(o_ref.dtype)


def _ffn_kernel_tiled(x_ref, w1_ref, b1_ref, w2_ref, b2_ref, o_ref, acc_ref):
    # Hidden dim tiled along grid axis 1; f32 accumulator in VMEM scratch.
    j = pl.program_id(1)

    @pl.when(j == 0)
    def _():
        acc_ref[...] = jnp.zeros_like(acc_ref)

    x = x_ref[...].astype(w1_ref.dtype)                      # in-kernel cast
    h = jnp.dot(x, w1_ref[...], preferred_element_type=jnp.float32)
    h = jnp.maximum(h + b1_ref[...], 0.0)
    # NOTE: with bf16 weights the ReLU intermediate is truncated to bf16 before
    # the second matmul (intentional MXU-throughput tradeoff; accumulation f32).
    acc_ref[...] += jnp.dot(h.astype(w2_ref.dtype), w2_ref[...],
                            preferred_element_type=jnp.float32)

    @pl.when(j == pl.num_programs(1) - 1)
    def _():
        o_ref[...] = (acc_ref[...] + b2_ref[...]).astype(o_ref.dtype)


# ----------------------------------------------------------------------------
# Wrapper
# ----------------------------------------------------------------------------
@functools.partial(jax.jit, static_argnames=("tm", "th"))
def position_wise_ffn(x, w1, b1, w2, b2, *, tm=None, th=None):
    """y = relu(x @ w1 + b1) @ w2 + b2.

    x: (B, S, d_model), w1: (d_model, d_hidden), b1: (d_hidden,),
    w2: (d_hidden, d_model), b2: (d_model,).
    The matmul compute dtype follows the weight dtype (pass bf16 weights for
    bf16 MXU compute; x is cast in-kernel).  Accumulation is always f32.
    """
    B, S, d_model = x.shape
    d_hidden = w1.shape[1]
    out_dtype = x.dtype
    M = B * S

    x_isz = jnp.dtype(x.dtype).itemsize
    w_isz = jnp.dtype(w1.dtype).itemsize
    out_isz = jnp.dtype(out_dtype).itemsize
    # Sub-32-bit dtypes pack 16 rows per sublane group -> 16-row alignment.
    row_align = 16 if min(w_isz, x_isz) < 4 else 8

    budget = _vmem_budget_bytes()
    bias_bytes = 2 * (d_hidden + d_model) * 4

    # ---- hidden tiling: keep the full hidden dim resident when the weights fit
    # comfortably (single-buffered); else largest 128-aligned divisor whose
    # double-buffered W1/W2 slices stay under ~half the budget.
    if th is None:
        full_w_bytes = 2 * d_model * d_hidden * w_isz
        if full_w_bytes <= int(budget * 0.6):
            th = d_hidden
        else:
            th_cap = max((budget // 2) // (4 * d_model * w_isz), 128)
            th_pick = _largest_aligned_divisor(d_hidden, 128, th_cap)
            if th_pick is None:
                # TODO(synk): d_hidden has no 128-aligned divisor that fits the
                # VMEM budget; falling back to the full hidden dim (may spill
                # on extreme shapes).
                th_pick = d_hidden
            th = th_pick
    assert d_hidden % th == 0 and (th == d_hidden or th % 128 == 0)
    n_h = d_hidden // th

    # ---- token tiling: fill the remaining VMEM budget (double-buffered x/out
    # tiles + f32 accumulator when the hidden dim is tiled).  No hard 256 cap:
    # W1/W2 slices are re-streamed once per row tile when n_h > 1, so a large
    # tm is what moves the kernel from HBM-bound to MXU-bound.
    if tm is None:
        if n_h == 1:
            w_vmem = 2 * d_model * d_hidden * w_isz + bias_bytes  # 1 buffer each
            per_row = 2 * d_model * (x_isz + out_isz)
        else:
            w_vmem = 2 * 2 * d_model * th * w_isz + bias_bytes     # 2 buffers each
            per_row = 2 * d_model * (x_isz + out_isz) + 4 * d_model  # + f32 acc
        avail = max(budget - w_vmem, 0)
        tm = (avail // per_row) // row_align * row_align
        tm = max(row_align, min(tm, 2048, _round_up(M, row_align)))
        if n_h == 1 and M > row_align:
            # Weights are fetched only once in this regime, so splitting the
            # token axis into >= 2 tiles (pipeline overlap / both v7x TCs) is free.
            tm = min(tm, _round_up(_cdiv(M, 2), row_align))
    assert tm % row_align == 0, "tm must be a multiple of the row alignment"

    n_m = _cdiv(M, tm)        # ragged tail block handled by Pallas (no jnp.pad)

    x2d = x.reshape(M, d_model)
    b1_2d = b1.reshape(1, d_hidden).astype(jnp.float32)
    b2_2d = b2.reshape(1, d_model).astype(jnp.float32)

    weight_passes = 1 if n_h == 1 else n_m
    flops = 4 * M * d_model * d_hidden
    bytes_accessed = int(
        M * d_model * (x_isz + out_isz)
        + weight_passes * 2 * d_model * d_hidden * w_isz
        + (d_hidden + d_model) * 4)

    const = pl.Buffered(1)     # constant-index blocks: single VMEM buffer
    if n_h == 1:
        kernel = _ffn_kernel_single
        grid = (n_m,)
        in_specs = [
            pl.BlockSpec((tm, d_model), lambda i: (i, 0)),                        # x tile
            pl.BlockSpec((d_model, d_hidden), lambda i: (0, 0), pipeline_mode=const),
            pl.BlockSpec((1, d_hidden), lambda i: (0, 0), pipeline_mode=const),
            pl.BlockSpec((d_hidden, d_model), lambda i: (0, 0), pipeline_mode=const),
            pl.BlockSpec((1, d_model), lambda i: (0, 0), pipeline_mode=const),
        ]
        out_specs = pl.BlockSpec((tm, d_model), lambda i: (i, 0))
        scratch_shapes = []
        dim_sem = ("parallel",)
    else:
        kernel = _ffn_kernel_tiled
        grid = (n_m, n_h)
        in_specs = [
            pl.BlockSpec((tm, d_model), lambda i, j: (i, 0)),                     # x tile
            pl.BlockSpec((d_model, th), lambda i, j: (0, j)),                     # W1 slice
            pl.BlockSpec((1, th), lambda i, j: (0, j)),                           # b1 slice
            pl.BlockSpec((th, d_model), lambda i, j: (j, 0)),                     # W2 slice
            pl.BlockSpec((1, d_model), lambda i, j: (0, 0), pipeline_mode=const), # b2
        ]
        out_specs = pl.BlockSpec((tm, d_model), lambda i, j: (i, 0))
        scratch_shapes = [pltpu.VMEM((tm, d_model), jnp.float32)]
        dim_sem = ("parallel", "arbitrary")

    out2d = pl.pallas_call(
        kernel,
        out_shape=jax.ShapeDtypeStruct((M, d_model), out_dtype),
        grid_spec=pltpu.PrefetchScalarGridSpec(
            num_scalar_prefetch=0,
            grid=grid,
            in_specs=in_specs,
            out_specs=out_specs,
            scratch_shapes=scratch_shapes,
        ),
        compiler_params=pltpu.CompilerParams(
            dimension_semantics=dim_sem,
            vmem_limit_bytes=int(budget),
        ),
        cost_estimate=pl.CostEstimate(
            flops=flops, transcendentals=0, bytes_accessed=bytes_accessed),
    )(x2d, w1, b1_2d, w2, b2_2d)

    return out2d.reshape(B, S, d_model)


# ----------------------------------------------------------------------------
# Reference + tests
# ----------------------------------------------------------------------------
def _reference_ffn(x, w1, b1, w2, b2):
    h = jnp.maximum(jnp.einsum("bsd,dh->bsh", x, w1) + b1, 0.0)
    return jnp.einsum("bsh,hd->bsd", h, w2) + b2


def _make_params(key, d_model, d_hidden):
    k1, kb1, k2, kb2 = jax.random.split(key, 4)
    lim1 = 1.0 / (d_model ** 0.5)
    lim2 = 1.0 / (d_hidden ** 0.5)
    w1 = jax.random.uniform(k1, (d_model, d_hidden), jnp.float32, -lim1, lim1)
    b1 = jax.random.uniform(kb1, (d_hidden,), jnp.float32, -lim1, lim1)
    w2 = jax.random.uniform(k2, (d_hidden, d_model), jnp.float32, -lim2, lim2)
    b2 = jax.random.uniform(kb2, (d_model,), jnp.float32, -lim2, lim2)
    return w1, b1, w2, b2


if __name__ == "__main__":
    key = jax.random.PRNGKey(0)
    kx, kp, kx2, kx3, kp3 = jax.random.split(key, 5)

    # ---- primary toy shapes: B=2, S=8, d_model=32 -> d_hidden=64 (n_h == 1).
    B, S, d_model, d_hidden = 2, 8, 32, 64
    x = jax.random.normal(kx, (B, S, d_model), dtype=jnp.float32)
    w1, b1, w2, b2 = _make_params(kp, d_model, d_hidden)

    out = jax.block_until_ready(position_wise_ffn(x, w1, b1, w2, b2))
    ref = _reference_ffn(x, w1, b1, w2, b2)
    assert out.shape == (B, S, d_model)
    assert jnp.allclose(out, ref, atol=1e-5, rtol=1e-5)

    # ---- ragged token count (M=14): Pallas masks the tail block, no jnp.pad.
    x_r = jax.random.normal(kx2, (2, 7, d_model), dtype=jnp.float32)
    out_r = jax.block_until_ready(position_wise_ffn(x_r, w1, b1, w2, b2))
    ref_r = _reference_ffn(x_r, w1, b1, w2, b2)
    assert jnp.allclose(out_r, ref_r, atol=1e-5, rtol=1e-5)

    # ---- hidden-dim tiling path (th=128 -> n_h=2) with the f32 accumulator.
    d_model2, d_hidden2 = 128, 256
    x3 = jax.random.normal(kx3, (2, 8, d_model2), dtype=jnp.float32)
    w1b, b1b, w2b, b2b = _make_params(kp3, d_model2, d_hidden2)
    out_h = jax.block_until_ready(position_wise_ffn(x3, w1b, b1b, w2b, b2b, th=128))
    ref_h = _reference_ffn(x3, w1b, b1b, w2b, b2b)
    assert jnp.allclose(out_h, ref_h, atol=1e-4, rtol=1e-4)

    # ---- bf16 compute path: weights cast once outside the jit; x cast in-kernel.
    w1_bf, w2_bf = w1b.astype(jnp.bfloat16), w2b.astype(jnp.bfloat16)
    out_bf = jax.block_until_ready(
        position_wise_ffn(x3, w1_bf, b1b, w2_bf, b2b, th=128))
    assert jnp.allclose(out_bf, ref_h, atol=0.1, rtol=0.1)

    print("KERNEL_OK")
</pallas_src>

<mosaic_0001>
module attributes {stable_mosaic.version = 11 : i64} {
  func.func @_ffn_kernel_single(%arg0: i32, %arg1: memref<8x32xf32, #tpu.memory_space<vmem>>, %arg2: memref<32x64xf32, #tpu.memory_space<vmem>>, %arg3: memref<1x64xf32, #tpu.memory_space<vmem>>, %arg4: memref<64x32xf32, #tpu.memory_space<vmem>>, %arg5: memref<1x32xf32, #tpu.memory_space<vmem>>, %arg6: memref<8x32xf32, #tpu.memory_space<vmem>>) attributes {dimension_semantics = [#tpu.dimension_semantics<parallel>], iteration_bounds = array<i64: 2>, scalar_prefetch = 0 : i64, scratch_operands = 0 : i64, tpu.core_type = #tpu.core_type<tc>, window_params = [{transform_indices = @transform_0, window_bounds = array<i64: 8, 32>}, {pipeline_mode = #tpu.pipeline_mode<synchronous>, transform_indices = @transform_1, window_bounds = array<i64: 32, 64>}, {pipeline_mode = #tpu.pipeline_mode<synchronous>, transform_indices = @transform_2, window_bounds = array<i64: 1, 64>}, {pipeline_mode = #tpu.pipeline_mode<synchronous>, transform_indices = @transform_3, window_bounds = array<i64: 64, 32>}, {pipeline_mode = #tpu.pipeline_mode<synchronous>, transform_indices = @transform_4, window_bounds = array<i64: 1, 32>}, {transform_indices = @transform_5, window_bounds = array<i64: 8, 32>}]} {
    %c0 = arith.constant 0 : index
    %c0_0 = arith.constant 0 : index
    %0 = vector.load %arg1[%c0, %c0_0] : memref<8x32xf32, #tpu.memory_space<vmem>>, vector<8x32xf32>
    %c0_1 = arith.constant 0 : index
    %c0_2 = arith.constant 0 : index
    %1 = vector.load %arg2[%c0_1, %c0_2] : memref<32x64xf32, #tpu.memory_space<vmem>>, vector<32x64xf32>
    %cst = arith.constant dense<0.000000e+00> : vector<8x64xf32>
    %2 = tpu.matmul %0, %1, %cst {dimension_numbers = #tpu.dot_dimension_numbers<[1], [0], [0], [1], [0, 0, 1, 1], [], []>} : vector<8x32xf32>, vector<32x64xf32>, vector<8x64xf32> -> vector<8x64xf32>
    %c0_3 = arith.constant 0 : index
    %c0_4 = arith.constant 0 : index
    %3 = vector.load %arg3[%c0_3, %c0_4] : memref<1x64xf32, #tpu.memory_space<vmem>>, vector<1x64xf32>
    %4 = vector.broadcast %3 : vector<1x64xf32> to vector<8x64xf32>
    %5 = arith.addf %2, %4 : vector<8x64xf32>
    %cst_5 = arith.constant 0.000000e+00 : f32
    %6 = vector.broadcast %cst_5 : f32 to vector<8x64xf32>
    %7 = arith.maximumf %5, %6 : vector<8x64xf32>
    %c0_6 = arith.constant 0 : index
    %c0_7 = arith.constant 0 : index
    %8 = vector.load %arg4[%c0_6, %c0_7] : memref<64x32xf32, #tpu.memory_space<vmem>>, vector<64x32xf32>
    %cst_8 = arith.constant dense<0.000000e+00> : vector<8x32xf32>
    %9 = tpu.matmul %7, %8, %cst_8 {dimension_numbers = #tpu.dot_dimension_numbers<[1], [0], [0], [1], [0, 0, 1, 1], [], []>} : vector<8x64xf32>, vector<64x32xf32>, vector<8x32xf32> -> vector<8x32xf32>
    %c0_9 = arith.constant 0 : index
    %c0_10 = arith.constant 0 : index
    %10 = vector.load %arg5[%c0_9, %c0_10] : memref<1x32xf32, #tpu.memory_space<vmem>>, vector<1x32xf32>
    %11 = vector.broadcast %10 : vector<1x32xf32> to vector<8x32xf32>
    %12 = arith.addf %9, %11 : vector<8x32xf32>
    %c0_11 = arith.constant 0 : index
    %c0_12 = arith.constant 0 : index
    %13 = vector.load %arg6[%c0_11, %c0_12] : memref<8x32xf32, #tpu.memory_space<vmem>>, vector<8x32xf32>
    tpu.vector_store %arg6[%c0_11, %c0_12], %12 {strides = array<i32>} : memref<8x32xf32, #tpu.memory_space<vmem>>, vector<8x32xf32>,
    return
  }
  func.func @transform_0(%arg0: i32) -> (i32, i32) {
    %c0_i32 = arith.constant 0 : i32
    %c0_i32_0 = arith.constant 0 : i32
    return %arg0, %c0_i32 : i32, i32
  }
  func.func @transform_1(%arg0: i32) -> (i32, i32) {
    %c0_i32 = arith.constant 0 : i32
    %c0_i32_0 = arith.constant 0 : i32
    %c0_i32_1 = arith.constant 0 : i32
    return %c0_i32, %c0_i32_0 : i32, i32
  }
  func.func @transform_2(%arg0: i32) -> (i32, i32) {
    %c0_i32 = arith.constant 0 : i32
    %c0_i32_0 = arith.constant 0 : i32
    %c0_i32_1 = arith.constant 0 : i32
    return %c0_i32, %c0_i32_0 : i32, i32
  }
  func.func @transform_3(%arg0: i32) -> (i32, i32) {
    %c0_i32 = arith.constant 0 : i32
    %c0_i32_0 = arith.constant 0 : i32
    %c0_i32_1 = arith.constant 0 : i32
    return %c0_i32, %c0_i32_0 : i32, i32
  }
  func.func @transform_4(%arg0: i32) -> (i32, i32) {
    %c0_i32 = arith.constant 0 : i32
    %c0_i32_0 = arith.constant 0 : i32
    %c0_i32_1 = arith.constant 0 : i32
    return %c0_i32, %c0_i32_0 : i32, i32
  }
  func.func @transform_5(%arg0: i32) -> (i32, i32) {
    %c0_i32 = arith.constant 0 : i32
    %c0_i32_0 = arith.constant 0 : i32
    return %arg0, %c0_i32 : i32, i32
  }
}

</mosaic_0001>

<bundles_post_ra>
// kernel: position_wise_ffn.1
= control target key start
LH: loop header
LB: loop body
LE: loop exit
PB: predicated region body
PF: predicated region fallthrough
CT: control target
= control target key end

     0   :  { %10 = vsyncpa [#allocation3], 0  ;;  %s830_s0 = inlined_call_operand.vmem [shape: f32[16,32], index: 0, kind: input, shape index: {}]   ;;  %s831_s1 = inlined_call_operand.vmem [shape: f32[32,64], index: 1, kind: input, shape index: {}]   ;;  %s832_s2 = inlined_call_operand.vmem [shape: f32[1,64], index: 2, kind: input, shape index: {}]   ;;  %s833_s3 = inlined_call_operand.vmem [shape: f32[64,32], index: 3, kind: input, shape index: {}]   ;;  %s834_s4 = inlined_call_operand.vmem [shape: f32[1,32], index: 4, kind: input, shape index: {}]   ;;  %s835_s5 = inlined_call_operand.hbm [shape: f32[16,32], index: 5, kind: output, shape index: {}]  }
   0x1   :  { %12 = vsyncpa [#allocation3 + $0x1], 0  ;;  %s686_s18 = smov 0   ;;  %s688_s19 = smov 0  }
   0x2   :  { %s690_s20 = smov 0   ;;  %s692_s21 = smov 0  }
   0x3 LB: > { %s707_s22 = sadd.s32 4294967295, %s650_s21   ;;  %s470_s23 = sadd.s32 4294967294, %s650_s21   ;;  %s650_s21 = sphi %s692_s21, %s841_s21   ;;  %s646_s20 = sphi %s690_s20, %s840_s20   ;;  %s642_s19 = sphi %s688_s19, %s839_s19   ;;  %s638_s18 = sphi %s686_s18, %s838_s18  }
   0x4   : > { %s711_s24 = sadd.s32 1, %s650_s21   ;;  %s135_s25 = sadd.s32 1, %s646_s20 }
   0x5   : > { %s132_s26 = ssub.s32 %s650_s21, %s711_s24  ;;  %p145_p0 = scmp.ne.s32.totalorder %s646_s20, %s642_s19 }
   0x6   : > { %p133_p1 = scmp.eq.s32.totalorder %s132_s26, 0  ;;  %p146_p2 = scmp.eq.s32.totalorder %s707_s22, 1 }
   0x7   : > { %p151_p3 = scmp.ne.s32.totalorder %s642_s19, %s638_s18  ;;  %p152_p4 = scmp.eq.s32.totalorder %s470_s23, 1 }
   0x8   : > { %s722_s27 = scalar_select %p133_p1, %s646_s20, %s135_s25  }
   0x9   : > { %p724_p5 = por %p146_p2, %p145_p0  ;;  %p728_p6 = por %p152_p4, %p151_p3 }
   0xa   : > { %p473_p7 = scmp.ge.s32.totalorder %s650_s21, 1  ;;  %p189_p8 = scmp.lt.s32.totalorder %s650_s21, 3 }
   0xc   : > { %p190_p9 = pnand %p473_p7, %p189_p8 }
   0xd   : > { %v221_v0 = vld [vmem:[%s831_s1] sm:$0xff] (!%p190_p9)  ;;  %v222_v1 = vld [vmem:[%s831_s1 + $0x8] sm:$0xff] (!%p190_p9)  ;;  %v223_v2 = vld [vmem:[%s831_s1 + $0x10] sm:$0xff] (!%p190_p9)  ;;  %v652_v3 = vmov (!%p190_p9), 0.0|0.0   ;;  %vm653_vm0 = vmmov (!%p190_p9), 0   ;;  %v654_v6 = vmov (!%p190_p9), 0.0  }
   0xe   : > { %193 = sbr.rel (%p190_p9) target bundleno = 470 (0x1d6), region = 40  ;;  %528 = vmatprep.subr.bf16.mxu0 (!%p190_p9), %v652_v3  ;;  %v529_v4 = vpack.c.bf16 (!%p190_p9), %v222_v1, %v221_v0  ;;  %v224_v5 = vld [vmem:[%s831_s1 + $0x18] sm:$0xff] (!%p190_p9)  ;;  %506 = vmatprep.mubr.msk.f32.mxu0 (!%p190_p9), %vm653_vm0, %v654_v6  ;;  %p216_p10 = scmp.lt.s32.totalorder (!%p190_p9), %s707_s22, 1  ;;  %v307_v7 = vld [vmem:[%s833_s3] sm:$0xff] (!%p190_p9)  ;;  %v308_v8 = vld [vmem:[%s833_s3 + $0x8] sm:$0xff] (!%p190_p9)  ;;  %vm232_vm1 = vcmask (!%p190_p9), 261120  }
   0xf   : > { %534 = vmatprep.subr.bf16.mxu1 (!%p190_p9), %v652_v3  ;;  %v535_v9 = vpack.c.bf16 (!%p190_p9), %v308_v8, %v307_v7  ;;  %v309_v10 = vld [vmem:[%s833_s3 + $0x10] sm:$0xff] (!%p190_p9)  ;;  %v310_v11 = vld [vmem:[%s833_s3 + $0x18] sm:$0xff] (!%p190_p9)  ;;  %525 = vmatprep.mubr.msk.f32.mxu1 (!%p190_p9), %vm653_vm0, %v654_v6  ;;  %v532_v12 = vpack.c.bf16 (!%p190_p9), %v224_v5, %v223_v2  ;;  %v311_v14 = vld [vmem:[%s833_s3 + $0x20] sm:$0xff] (!%p190_p9)  ;;  %vm322_vm2 = vcmask (!%p190_p9), 523264   ;;  %s213_s26 = sand.u32 (!%p190_p9), 1, %s642_s19   ;;  %s481_s8 = sshll.u32 (!%p190_p9), %s707_s22, 7 }
  0x10   : > { %530 = vmatpush3.bf16.msra.mxu0 (!%p190_p9), %v529_v4  ;;  %v538_v13 = vpack.c.bf16 (!%p190_p9), %v310_v11, %v309_v10  ;;  %v312_v15 = vld [vmem:[%s833_s3 + $0x28] sm:$0xff] (!%p190_p9)  ;;  %v313_v18 = vld [vmem:[%s833_s3 + $0x30] sm:$0xff] (!%p190_p9)  ;;  %v314_v19 = vld [vmem:[%s833_s3 + $0x38] sm:$0xff] (!%p190_p9)  ;;  %s398_s14 = scalar_lea.sflag (!%p190_p9), [#allocation3], %s213_s26 }
  0x11   : > { %531 = vmatprep.subr.bf16.mxu0 (!%p190_p9), %v652_v3  ;;  %536 = vmatpush3.bf16.msra.mxu1 (!%p190_p9), %v535_v9  ;;  %v541_v17 = vpack.c.bf16 (!%p190_p9), %v312_v15, %v311_v14  ;;  %v544_v20 = vpack.c.bf16 (!%p190_p9), %v314_v19, %v313_v18  ;;  %v476_v21 = vld [vmem:[%s832_s2] ss:$0 sm:$0xff] (!%p190_p9) }
  0x12   : > { %537 = vmatprep.subr.bf16.mxu1 (!%p190_p9), %v652_v3  ;;  %v478_v26 = vld [vmem:[%s834_s4] ss:$0 sm:$0xff] (!%p190_p9) }
  0x14   : > { %533 = vmatpush3.bf16.msra.mxu0 (!%p190_p9), %v532_v12 }
  0x15   : > { %s217_s30 = scalar_select %p216_p10, %s707_s22, 1  ;;  %539 = vmatpush3.bf16.msra.mxu1 %v538_v13 }
  0x16   : > { %540 = vmatprep.subr.bf16.mxu1 %v652_v3  ;;  %s655_s22 = smov [#allocation2]  }
  0x17   : > { %s475_s6 = sshll.u32 %s217_s30, 3  ;;  %s474_s30 = sshll.u32 %s213_s26, 3 }
  0x18   : > { %s219_s13 = scalar_lea.vmem %s830_s0, %s475_s6  ;;  %s215_s9 = scalar_lea.vmem [#allocation2], %s474_s30 }
  0x19   : > { %v220_v16 = vld [vmem:[%s219_s13] sm:$0xff]  ;;  %542 = vmatpush3.bf16.msra.mxu1 %v541_v17  ;;  %s411_s10 = sshll.u32 %s215_s9, 4  ;;  %s787_s13 = scalar_lea.hbm %s835_s5, %s481_s8  ;;  %s789_s10 = int_to_ptr.vmem [resolvable:$true] %s411_s10 }
  0x1a   : > { %507 = vmatmul.mubr.msk.f32.vlgmr.msra.gmra.mrb[0].mxu0 %vm232_vm1, %v220_v16  ;;  %543 = vmatprep.subr.bf16.mxu1 %v652_v3  ;;  %s588_s15 = scalar_lea.vmem %s789_s10, 128  ;;  %s592_s16 = sshll.u32 %s655_s22, 4  ;;  %s593_s16 = int_to_ptr.vmem [resolvable:$false] %s592_s16 }
  0x1b   : > { %p589_p11 = scmp.ne.s32.totalorder %s789_s10, %s588_s15  ;;  %s594_s17 = scalar_lea.vmem %s593_s16, 256 }
  0x1c   : > { %p595_p0 = scmp.lt.s32.totalorder %s789_s10, %s593_s16  ;;  %p596_p1 = scmp.lt.s32.totalorder %s594_s17, %s588_s15 }
  0x1d   : > { %545 = vmatpush3.bf16.msra.mxu1 %v544_v20  ;;  %p590_p12 = pnand %p589_p11, %p724_p5 }
  0x1e   : > { %p597_p2 = por %p596_p1, %p595_p0 }
  0x1f   : > { %p591_p13 = pneg %p590_p12 }
  0x21   : > { %p598_p3 = pnand %p597_p2, %p591_p13 }
  0xed   : > { %v302_v22 = vpop.f32.mrb[0].mxu0 }
  0xee   : > { %v303_v23 = vadd.f32 %v476_v21, %v302_v22  ;;  %v508_v24 = vpop.f32.mrb[1].mxu0 }
  0xf0   : > { %v306_v25 = vmax.f32 %v303_v23, 0.0 }
  0xf2   : > { %526 = vmatmul.mubr.msk.f32.vlgmr.msra.gmra.mrb[0].mxu1 %vm322_vm2, %v306_v25 }
 0x1c5   : > { %v392_v27 = vpop.f32.mrb[0].mxu1 }
 0x1c6   : > { %v393_v28 = vadd.f32 %v478_v26, %v392_v27  ;;  %v527_v29 = vpop.f32.mrb[1].mxu1 }
 0x1c8   : > { %396 = vst.msk [vmem:[%s215_s9] sm:$0xff] %vm232_vm1, %v393_v28 }
 0x1c9   : > { %601 = shalt.err (!%p598_p3)
}
 0x1ca   : > { %s602_s23 = scalar_lea.hbm %s787_s13, 128  ;;  %s606_s30 = scalar_lea.hbm %s835_s5, 256 }
 0x1cb   : > { %p603_p4 = scmp.ne.s32.totalorder %s787_s13, %s602_s23  ;;  %p607_p9 = scmp.lt.u32.totalorder %s787_s13, %s835_s5 }
 0x1cc   : > { %p608_p10 = scmp.lt.u32.totalorder %s606_s30, %s602_s23  ;;  %p610_p12 = scmp.lt.u32.totalorder %s602_s23, %s787_s13 }
 0x1cd   : > { %p604_p7 = pnand %p603_p4, %p724_p5 }
 0x1ce   : > { %p609_p11 = por %p608_p10, %p607_p9 }
 0x1cf   : > { %p605_p8 = pneg %p604_p7 }
 0x1d0   : > { %p611_p13 = por %p610_p12, %p609_p11 }
 0x1d2   : > { %p612_p0 = pnand %p611_p13, %p605_p8 }
 0x1d4   : > { %615 = shalt.err (!%p612_p0)
}
 0x1d5   : > { %546 = dma.vmem_to_hbm [thread:$0]  (%p724_p5), %s789_s10, 128, %s787_s13, %s398_s14  }
 0x1d6 PF: > { %p552_p1 = scmp.ge.s32.totalorder %s650_s21, 2  ;;  %s423_s8 = sand.u32 1, %s638_s18  }
 0x1d7   : > { %s424_s9 = scalar_lea.sflag [#allocation3], %s423_s8 }
 0x1d8   : > { %p549_p2 = pnand %p552_p1, %p728_p6 }
 0x1da   : > { %633 = dma.done.wait (!%p549_p2), %s424_s9, 128  }
 0x1db   : > { %635 = vsyncadd (!%p549_p2), %s424_s9, 4294967168  ;;  %p15_p3 = scmp.ge.s32.totalorder %s711_s24, 4   ;;  %s838_s18 = smov %s642_s19 }
 0x1dc   : > { %s839_s19 = smov %s646_s20  ;;  %s840_s20 = smov %s722_s27 }
 0x1dd   : > { %s841_s21 = smov %s711_s24  ;;  %17 = sbr.rel (!%p15_p3) target bundleno = 3 (0x3), region = 75 }
 0x1e4   :  { %429 = vsyncpa [#allocation3], 1 }
 0x1e5   :  { %431 = vsyncpa [#allocation3 + $0x1], 1 }

</bundles_post_ra>
